<compile_context>
chip_gen: v6e
topology: v6e:2x2x1
jax: 0.10.0
libtpu: 0.0.40
codegen_flags: <defaults>
</compile_context>

<pallas_src>
import math

import jax
import jax.numpy as jnp
from jax.experimental import pallas as pl
from jax.experimental.pallas import tpu as pltpu


# ---------------------------------------------------------------------------
# Pallas kernel: elementwise hot path  out = x + scale * pe  (broadcast over
# the batch axis).
# ---------------------------------------------------------------------------
def _pe_add_kernel(scale_ref, pe_ref, x_ref, o_ref):
    # scale_ref: SMEM (1,)          f32
    # pe_ref:    VMEM (tS, 1, D)    pe rows for this sequence tile
    # x_ref:     VMEM (tS, B, D)
    # o_ref:     VMEM (tS, B, D)    (aliased onto x in HBM)
    scale = scale_ref[0]
    # (tS, 1, D) broadcasts against (tS, B, D); explicit cast keeps bf16
    # activations correct (compute promotes to f32, store downcasts).
    o_ref[...] = (x_ref[...] + scale * pe_ref[...]).astype(o_ref.dtype)


def positional_encoding_forward(x, pe_table, scale, *, target_tile_bytes=4 << 20):
    """out = x + scale * pe_table[:S]   (dropout = identity / eval mode).

    x:        (S, B, D)
    pe_table: (max_len, 1, D)  -- same shape convention as the PyTorch buffer
    scale:    (1,) float32
    """
    S, B, D = x.shape
    assert pe_table.shape[0] >= S and pe_table.shape[1:] == (1, D)

    itemsize = jnp.dtype(x.dtype).itemsize
    row_bytes = B * D * itemsize
    # ~target_tile_bytes per x tile: large enough to amortize the ~0.35 us
    # per-step overhead and approach the HBM roofline, small enough that the
    # double-buffered working set fits every generation's VMEM budget.
    tile_s = int(max(1, min(S, target_tile_bytes // max(row_bytes, 1))))
    grid = (pl.cdiv(S, tile_s),)

    x_tile_bytes = tile_s * row_bytes
    pe_tile_bytes = tile_s * D * jnp.dtype(pe_table.dtype).itemsize
    # 2 buffers each for x-in, out, pe-in, plus headroom.
    vmem_limit = 2 * (2 * x_tile_bytes + pe_tile_bytes) + (2 << 20)
    vmem_limit = int(max(vmem_limit, 16 << 20))

    out = pl.pallas_call(
        _pe_add_kernel,
        out_shape=jax.ShapeDtypeStruct((S, B, D), x.dtype),
        grid=grid,
        in_specs=[
            pl.BlockSpec(memory_space=pltpu.SMEM),              # scale scalar
            pl.BlockSpec((tile_s, 1, D), lambda i: (i, 0, 0)),  # pe rows (no host slice)
            pl.BlockSpec((tile_s, B, D), lambda i: (i, 0, 0)),  # x tile
        ],
        out_specs=pl.BlockSpec((tile_s, B, D), lambda i: (i, 0, 0)),
        # Write the result in place over x: no second (S, B, D) HBM buffer.
        input_output_aliases={2: 0},
        compiler_params=pltpu.CompilerParams(
            dimension_semantics=("parallel",),  # shard S-tiles across TCs (v7x megacore)
            vmem_limit_bytes=vmem_limit,
        ),
    )(scale, pe_table, x)
    return out


# ---------------------------------------------------------------------------
# Parameter / buffer construction (deterministic, mirrors the PyTorch __init__)
# ---------------------------------------------------------------------------
def make_pe_table(d_model, max_len=5000, dtype=jnp.float32):
    """Returns pe buffer of shape (max_len, 1, d_model), like the PyTorch module.

    Pass dtype matching the activations (e.g. bf16) to halve pe HBM traffic.
    """
    position = jnp.arange(0, max_len, dtype=jnp.float32)[:, None]         # (L, 1)
    div_term = jnp.exp(
        jnp.arange(0, d_model, 2, dtype=jnp.float32)
        * (-math.log(10000.0) / d_model)
    )                                                                     # (D/2,)
    angles = position * div_term                                          # (L, D/2)
    pe = jnp.zeros((max_len, d_model), dtype=jnp.float32)
    pe = pe.at[:, 0::2].set(jnp.sin(angles))
    pe = pe.at[:, 1::2].set(jnp.cos(angles))
    return pe[:, None, :].astype(dtype)                                   # (L, 1, D)


if __name__ == "__main__":
    # Small shapes consistent with the module: seq=8, batch=2, d_model=32.
    S, B, D = 8, 2, 32
    max_len = 64

    key = jax.random.PRNGKey(0)
    x = jax.random.normal(key, (S, B, D), dtype=jnp.float32)

    # nn.Parameter(torch.ones(1))
    scale = jnp.ones((1,), dtype=jnp.float32)
    pe_table = make_pe_table(D, max_len=max_len)          # (max_len, 1, D)

    # Pure-JAX reference of the same math (computed before the in-place kernel).
    ref = x + scale[0] * pe_table[:S]                     # broadcast over batch

    out = positional_encoding_forward(x, pe_table, scale)
    out = jax.block_until_ready(out)

    assert out.shape == (S, B, D)
    assert jnp.allclose(out, ref, atol=1e-6), "mismatch vs reference"

    print("KERNEL_OK")
</pallas_src>

<mosaic_0001>
module attributes {stable_mosaic.version = 11 : i64} {
  func.func @_pe_add_kernel(%arg0: i32, %arg1: memref<1xf32, #tpu.memory_space<smem>>, %arg2: memref<8x1x32xf32, #tpu.memory_space<vmem>>, %arg3: memref<8x2x32xf32, #tpu.memory_space<vmem>>, %arg4: memref<8x2x32xf32, #tpu.memory_space<vmem>>) attributes {dimension_semantics = [#tpu.dimension_semantics<parallel>], iteration_bounds = array<i64: 1>, scalar_prefetch = 0 : i64, scratch_operands = 0 : i64, tpu.core_type = #tpu.core_type<tc>, window_params = [{transform_indices = @transform_0, window_bounds = array<i64: 1>}, {transform_indices = @transform_1, window_bounds = array<i64: 8, 1, 32>}, {transform_indices = @transform_2, window_bounds = array<i64: 8, 2, 32>}, {transform_indices = @transform_3, window_bounds = array<i64: 8, 2, 32>}]} {
    %c0 = arith.constant 0 : index
    %0 = memref.load %arg1[%c0] : memref<1xf32, #tpu.memory_space<smem>>
    %c0_0 = arith.constant 0 : index
    %c0_1 = arith.constant 0 : index
    %c0_2 = arith.constant 0 : index
    %1 = vector.load %arg3[%c0_0, %c0_1, %c0_2] : memref<8x2x32xf32, #tpu.memory_space<vmem>>, vector<8x2x32xf32>
    %c0_3 = arith.constant 0 : index
    %c0_4 = arith.constant 0 : index
    %c0_5 = arith.constant 0 : index
    %2 = vector.load %arg2[%c0_3, %c0_4, %c0_5] : memref<8x1x32xf32, #tpu.memory_space<vmem>>, vector<8x1x32xf32>
    %3 = vector.broadcast %0 : f32 to vector<8x1x32xf32>
    %4 = arith.mulf %3, %2 : vector<8x1x32xf32>
    %5 = vector.broadcast %4 : vector<8x1x32xf32> to vector<8x2x32xf32>
    %6 = arith.addf %1, %5 : vector<8x2x32xf32>
    %c0_6 = arith.constant 0 : index
    %c0_7 = arith.constant 0 : index
    %c0_8 = arith.constant 0 : index
    %7 = vector.load %arg4[%c0_6, %c0_7, %c0_8] : memref<8x2x32xf32, #tpu.memory_space<vmem>>, vector<8x2x32xf32>
    tpu.vector_store %arg4[%c0_6, %c0_7, %c0_8], %6 {strides = array<i32>} : memref<8x2x32xf32, #tpu.memory_space<vmem>>, vector<8x2x32xf32>,
    return
  }
  func.func @transform_0(%arg0: i32) -> i32 {
    %c0_i32 = arith.constant 0 : i32
    %c0_i32_0 = arith.constant 0 : i32
    return %c0_i32 : i32
  }
  func.func @transform_1(%arg0: i32) -> (i32, i32, i32) {
    %c0_i32 = arith.constant 0 : i32
    %c0_i32_0 = arith.constant 0 : i32
    %c0_i32_1 = arith.constant 0 : i32
    return %arg0, %c0_i32, %c0_i32_0 : i32, i32, i32
  }
  func.func @transform_2(%arg0: i32) -> (i32, i32, i32) {
    %c0_i32 = arith.constant 0 : i32
    %c0_i32_0 = arith.constant 0 : i32
    %c0_i32_1 = arith.constant 0 : i32
    return %arg0, %c0_i32, %c0_i32_0 : i32, i32, i32
  }
  func.func @transform_3(%arg0: i32) -> (i32, i32, i32) {
    %c0_i32 = arith.constant 0 : i32
    %c0_i32_0 = arith.constant 0 : i32
    %c0_i32_1 = arith.constant 0 : i32
    return %arg0, %c0_i32, %c0_i32_0 : i32, i32, i32
  }
}

</mosaic_0001>

<bundles_post_ra>
// kernel: tpu_custom_call.1
= control target key start
LH: loop header
LB: loop body
LE: loop exit
PB: predicated region body
PF: predicated region fallthrough
CT: control target
= control target key end

     0   :  { %9 = vsyncpa [#allocation4], 0  ;;  %s257_s0 = inlined_call_operand.<no memory space> [shape: f32[1], index: 0, kind: input, shape index: {}]   ;;  %s258_s1 = inlined_call_operand.vmem [shape: f32[64,1,32], index: 1, kind: input, shape index: {}]   ;;  %s259_s2 = inlined_call_operand.hbm [shape: f32[8,2,32], index: 2, kind: input, shape index: {}, may-alias: {2,3}]   ;;  %s260_s3 = inlined_call_operand.hbm [shape: f32[8,2,32], index: 3, kind: output, shape index: {}, may-alias: {2,3}]  }
   0x1   :  { %10 = vsyncpa [#allocation5], 0  ;;  %s186_s12 = smov [#allocation3]  }
   0x2   :  { %s20_s13 = sshll.u32 %s186_s12, 4  ;;  %s21_s13 = int_to_ptr.vmem [resolvable:$true] %s20_s13 }
   0x3   :  { %s150_s14 = scalar_lea.vmem %s21_s13, 256  ;;  %p155_p1 = scmp.lt.s32.totalorder %s21_s13, %s21_s13 }
   0x4   :  { %p151_p0 = scmp.ne.s32.totalorder %s21_s13, %s150_s14  ;;  %p156_p2 = scmp.lt.s32.totalorder %s150_s14, %s150_s14 }
   0x6   :  { %p157_p3 = por %p156_p2, %p155_p1 }
   0x8   :  { %p158_p4 = pnand %p157_p3, %p151_p0 }
   0xa   :  { %161 = shalt.err (!%p158_p4)
}
   0xb   :  { %s187_s15 = smov 32   ;;  %s188_s16 = smov 2  }
   0xc   :  { %26 = dma.hbm_to_vmem [thread:$0]  %s259_s2, 256, %s21_s13, [#allocation4], %s187_s15, %s187_s15, %s188_s16  }
   0xd   :  { %182 = dma.done.wait [#allocation4], 256  }
   0xe   :  { %183 = vsyncadd [#allocation4], 4294967040  ;;  %v64_v0 = vlaneseq  ;;  %v47_v2 = vstv %s257_s0  ;;  %v39_v4 = vld [vmem:[%s258_s1] sm:$0x1]  ;;  %vm112_vm0 = vcmask 254976   ;;  %s189_s8 = smov [#allocation6]  }
   0xf   :  { %v48_v5 = vmul.f32 %v47_v2, %v39_v4  ;;  %v40_v6 = vld [vmem:[%s258_s1 + $0x1] sm:$0x1]  ;;  %v41_v7 = vld [vmem:[%s258_s1 + $0x2] sm:$0x1]  ;;  %v42_v12 = vld [vmem:[%s258_s1 + $0x3] sm:$0x1] }
  0x10   :  { %v65_v1 = vshrl.u32 %v64_v0, 7  ;;  %v31_v8 = vld [vmem:[#allocation3] sm:$0x3]  ;;  %v32_v9 = vld [vmem:[#allocation3 + $0x2] sm:$0x3]  ;;  %v49_v10 = vmul.f32 %v47_v2, %v40_v6  ;;  %v50_v11 = vmul.f32 %v47_v2, %v41_v7  ;;  %v51_v15 = vmul.f32 %v47_v2, %v42_v12  ;;  %s126_s9 = sshll.u32 %s189_s8, 4  ;;  %s127_s9 = int_to_ptr.vmem [resolvable:$true] %s126_s9 }
  0x11   :  { %v33_v14 = vld [vmem:[#allocation3 + $0x4] sm:$0x3]  ;;  %v34_v20 = vld [vmem:[#allocation3 + $0x6] sm:$0x3]  ;;  %v35_v26 = vld [vmem:[#allocation3 + $0x8] sm:$0x3]  ;;  %p167_p6 = scmp.lt.s32.totalorder %s127_s9, %s127_s9 }
  0x12   :  { %v66_v3 = vsub.s32 0, %v65_v1  ;;  %v43_v16 = vld [vmem:[%s258_s1 + $0x4] sm:$0x1]  ;;  %v44_v17 = vld [vmem:[%s258_s1 + $0x5] sm:$0x1] }
  0x13   :  { %v52_v21 = vmul.f32 %v47_v2, %v43_v16  ;;  %v53_v22 = vmul.f32 %v47_v2, %v44_v17  ;;  %v45_v23 = vld [vmem:[%s258_s1 + $0x6] sm:$0x1]  ;;  %v36_v27 = vld [vmem:[#allocation3 + $0xa] sm:$0x3]  ;;  %v46_v29 = vld [vmem:[%s258_s1 + $0x7] sm:$0x1] }
  0x14   :  { %v67_v13 = vrot.slane %v48_v5, %v66_v3  ;;  %v71_v18 = vrot.slane %v49_v10, %v66_v3  ;;  %v75_v19 = vrot.slane %v50_v11, %v66_v3  ;;  %v79_v25 = vrot.slane %v51_v15, %v66_v3  ;;  %v37_v34 = vld [vmem:[#allocation3 + $0xc] sm:$0x3]  ;;  %v38_v40 = vld [vmem:[#allocation3 + $0xe] sm:$0x3]  ;;  %s162_s1 = scalar_lea.vmem %s127_s9, 256 }
  0x15   :  { %v54_v28 = vmul.f32 %v47_v2, %v45_v23  ;;  %v83_v32 = vrot.slane %v52_v21, %v66_v3  ;;  %v87_v33 = vrot.slane %v53_v22, %v66_v3  ;;  %v55_v37 = vmul.f32 %v47_v2, %v46_v29  ;;  %p163_p5 = scmp.ne.s32.totalorder %s127_s9, %s162_s1  ;;  %p168_p7 = scmp.lt.s32.totalorder %s162_s1, %s162_s1 }
  0x16   :  { %v104_v24 = vadd.f32 %v67_v13, %v31_v8  ;;  %v105_v30 = vadd.f32 %v71_v18, %v32_v9  ;;  %v106_v31 = vadd.f32 %v75_v19, %v33_v14  ;;  %v107_v35 = vadd.f32 %v79_v25, %v34_v20 }
  0x17   :  { %v91_v36 = vrot.slane %v54_v28, %v66_v3  ;;  %v108_v38 = vadd.f32 %v83_v32, %v35_v26  ;;  %v109_v39 = vadd.f32 %v87_v33, %v36_v27  ;;  %v95_v42 = vrot.slane %v55_v37, %v66_v3  ;;  %p169_p8 = por %p168_p7, %p167_p6 }
  0x18   :  { %113 = vst.msk [vmem:[#allocation6] sm:$0x3] %vm112_vm0, %v104_v24  ;;  %114 = vst.msk [vmem:[#allocation6 + $0x2] sm:$0x3] %vm112_vm0, %v105_v30 }
  0x19   :  { %115 = vst.msk [vmem:[#allocation6 + $0x4] sm:$0x3] %vm112_vm0, %v106_v31  ;;  %116 = vst.msk [vmem:[#allocation6 + $0x6] sm:$0x3] %vm112_vm0, %v107_v35  ;;  %v110_v41 = vadd.f32 %v91_v36, %v37_v34  ;;  %v111_v43 = vadd.f32 %v95_v42, %v38_v40  ;;  %p170_p9 = pnand %p169_p8, %p163_p5 }
  0x1a   :  { %117 = vst.msk [vmem:[#allocation6 + $0x8] sm:$0x3] %vm112_vm0, %v108_v38  ;;  %118 = vst.msk [vmem:[#allocation6 + $0xa] sm:$0x3] %vm112_vm0, %v109_v39 }
  0x1b   :  { %119 = vst.msk [vmem:[#allocation6 + $0xc] sm:$0x3] %vm112_vm0, %v110_v41  ;;  %120 = vst.msk [vmem:[#allocation6 + $0xe] sm:$0x3] %vm112_vm0, %v111_v43 }
  0x1c   :  { %173 = shalt.err (!%p170_p9)
}
  0x1d   :  { %132 = dma.vmem_to_hbm [thread:$0]  %s127_s9, 256, %s260_s3, [#allocation5], %s187_s15, %s187_s15, %s188_s16  }
  0x1e   :  { %184 = dma.done.wait [#allocation5], 256  }
  0x1f   :  { %185 = vsyncadd [#allocation5], 4294967040 }
  0x20   :  { %136 = vsyncpa [#allocation4], 1 }
  0x21   :  { %137 = vsyncpa [#allocation5], 1 }

</bundles_post_ra>
